<compile_context>
chip_gen: v7x
topology: tpu7x:2x2x1
jax: 0.10.0
libtpu: 0.0.40
codegen_flags: <defaults>
</compile_context>

<pallas_src>
import functools

import jax
import jax.numpy as jnp
from jax.experimental import pallas as pl
from jax.experimental.pallas import tpu as pltpu


def _pow_nonneg(base, gamma):
    """base ** gamma for base >= 0, with cheap special cases (gamma is static)."""
    if gamma == 0.0:
        return jnp.ones_like(base)
    if gamma == 0.5:
        return jnp.sqrt(base)
    if gamma == 1.0:
        return base
    if gamma == 2.0:
        return base * base
    return jnp.exp(gamma * jnp.log(jnp.maximum(base, 1e-30)))


def _nfl_kernel(x_ref, t_ref, out_ref, *, gamma, block_lanes, n_valid):
    # x_ref:   (C, block_lanes) logits  (classes on sublanes, samples on lanes)
    # t_ref:   (1, block_lanes) int32 targets
    # out_ref: (1, block_lanes) per-sample unscaled loss
    i = pl.program_id(0)

    x = x_ref[...].astype(jnp.float32)   # cast in-kernel so bf16 inputs DMA at half width
    t = t_ref[...]

    # Numerically stable log-softmax over the class (sublane) axis.
    # Single full-tile exp; probabilities reuse it via a (1, bl) reciprocal.
    m = jnp.max(x, axis=0, keepdims=True)                       # (1, bl)
    xm = x - m
    e = jnp.exp(xm)                                             # (C, bl) — only full-tile exp
    s = jnp.sum(e, axis=0, keepdims=True)                       # (1, bl)
    logp = xm - jnp.log(s)                                      # (C, bl), <= 0
    p = e * pl.reciprocal(s, approx=True)                       # (C, bl), no divide / 2nd exp

    # Per-sample normalizer: sum_c -(1 - p_c)**gamma * logp_c.
    w = _pow_nonneg(jnp.maximum(1.0 - p, 0.0), gamma)
    normalizor = jnp.sum(-w * logp, axis=0, keepdims=True)      # (1, bl)

    # Target log-prob / prob via a one-hot sublane mask (log-space gather,
    # pt taken from the already-computed p — no extra exp).
    cls = jax.lax.broadcasted_iota(jnp.int32, logp.shape, 0)
    sel = cls == t
    logpt = jnp.sum(jnp.where(sel, logp, 0.0), axis=0, keepdims=True)   # (1, bl)
    pt = jnp.sum(jnp.where(sel, p, 0.0), axis=0, keepdims=True)         # (1, bl)

    loss = -_pow_nonneg(jnp.maximum(1.0 - pt, 0.0), gamma) * logpt
    loss = loss * pl.reciprocal(normalizor, approx=True)        # (1, bl)

    if n_valid % block_lanes != 0:
        # Ragged last tile only: zero lanes past the true batch size. Garbage
        # from the out-of-bounds input read stays confined to those lanes
        # (all math is per-lane) and is selected away here.
        last = pl.num_programs(0) - 1

        @pl.when(i == last)
        def _():
            col = (jax.lax.broadcasted_iota(jnp.int32, loss.shape, 1)
                   + i * block_lanes)
            out_ref[...] = jnp.where(col < n_valid, loss, 0.0)

        @pl.when(i != last)
        def _():
            out_ref[...] = loss
    else:
        out_ref[...] = loss


def _round_up(x, m):
    return (x + m - 1) // m * m


def _choose_block_lanes(n, c, itemsize, tile_budget_bytes):
    """Pick the batch (lane) tile width from a VMEM byte budget."""
    # Per-lane footprint: 2 double-buffered input columns (input dtype, padded
    # to its sublane multiple) + ~5 full-tile f32 intermediates (xm, e, logp,
    # p, w) + double-buffered 8-sublane-padded target/output rows.
    sub = {4: 8, 2: 16, 1: 32}.get(itemsize, 8)
    c_in = _round_up(max(c, 1), sub)
    c_f32 = _round_up(max(c, 1), 8)
    per_lane = 2 * c_in * itemsize + 5 * c_f32 * 4 + 4 * 8 * 4
    bl = int(tile_budget_bytes // per_lane)
    if bl >= n:
        return n  # single full-extent tile (legal block shape; no ragged mask)
    bl = min(bl, 65536)
    return max(128, (bl // 128) * 128)


def normalized_focal_loss(logits, targets, *, gamma=0.5, scale=1.0,
                          size_average=True, block_lanes=None,
                          vmem_limit_bytes=48 * 1024 * 1024):
    """logits: (N, C) float, targets: (N,) int -> scalar float32.

    vmem_limit_bytes is conservative for v7x (64 MiB physical); on v5e/v6e
    (128 MiB) it can be raised for vocab-scale C.
    """
    n, c = logits.shape
    itemsize = jnp.dtype(logits.dtype).itemsize

    if block_lanes is None:
        block_lanes = _choose_block_lanes(n, c, itemsize, vmem_limit_bytes // 2)

    num_tiles = (n + block_lanes - 1) // block_lanes

    # Class dim -> sublanes, batch -> lanes: lane-dense vector work for any C.
    # TODO(synk): accept a pre-transposed (C, N) input to skip this copy when
    #             N*C is huge and the producer can emit it directly.
    x_t = jnp.transpose(logits)                          # (C, N)
    t_row = targets.reshape(1, n).astype(jnp.int32)      # (1, N)

    kernel = functools.partial(_nfl_kernel, gamma=float(gamma),
                               block_lanes=block_lanes, n_valid=n)

    cost = pl.CostEstimate(
        flops=10 * n * c,
        transcendentals=2 * n * c,   # one exp + one sqrt per element
        bytes_accessed=n * c * itemsize + n * 4 + num_tiles * block_lanes * 4,
    )

    per_sample = pl.pallas_call(
        kernel,
        out_shape=jax.ShapeDtypeStruct((1, num_tiles * block_lanes), jnp.float32),
        grid_spec=pltpu.PrefetchScalarGridSpec(
            num_scalar_prefetch=0,
            grid=(num_tiles,),
            in_specs=[
                # If DMA ever shows up exposed (large-C streaming path), bump
                # this spec to pipeline_mode=pl.Buffered(3).
                pl.BlockSpec((c, block_lanes), lambda i: (0, i)),
                pl.BlockSpec((1, block_lanes), lambda i: (0, i)),
            ],
            out_specs=pl.BlockSpec((1, block_lanes), lambda i: (0, i)),
        ),
        compiler_params=pltpu.CompilerParams(
            # Independent per-tile outputs -> safe to shard across TensorCores.
            dimension_semantics=("parallel",),
            vmem_limit_bytes=vmem_limit_bytes,
        ),
        cost_estimate=cost,
    )(x_t, t_row)

    total = jnp.sum(per_sample)
    if size_average:
        return total * (float(scale) / n)
    return total * float(scale)


def _nfl_reference(logits, targets, gamma=0.5, scale=1.0, size_average=True):
    logp = jax.nn.log_softmax(logits.astype(jnp.float32), axis=1)
    p = jnp.exp(logp)
    normalizor = jnp.sum(-((1.0 - p) ** gamma) * logp, axis=1)
    logpt = jnp.take_along_axis(
        logp, targets.reshape(-1, 1).astype(jnp.int32), axis=1)[:, 0]
    pt = jnp.exp(logpt)
    loss = -((1.0 - pt) ** gamma) * logpt
    loss = scale * loss / normalizor
    return jnp.mean(loss) if size_average else jnp.sum(loss)


if __name__ == "__main__":
    key = jax.random.PRNGKey(0)
    k1, k2 = jax.random.split(key)

    # Small shapes consistent with the module (num_classes=10); N deliberately
    # not a multiple of 128 to exercise the ragged-last-tile masking.
    N, C = 300, 10
    gamma, scale = 0.5, 1.0

    logits = jax.random.normal(k1, (N, C), dtype=jnp.float32) * 3.0
    targets = jax.random.randint(k2, (N,), 0, C, dtype=jnp.int32)

    ref = jax.block_until_ready(
        _nfl_reference(logits, targets, gamma=gamma, scale=scale))

    # Tolerance covers the approximate EUP reciprocals (pl.reciprocal approx=True);
    # structural errors would be orders of magnitude larger.
    TOL = dict(atol=5e-3, rtol=5e-3)

    # Multi-tile path with a ragged, masked last tile (300 = 2*128 + 44).
    out = jax.block_until_ready(
        normalized_focal_loss(logits, targets, gamma=gamma, scale=scale,
                              block_lanes=128))
    assert jnp.allclose(out, ref, **TOL), (out, ref)

    # Default (auto-tiled) path: one full-extent lane-dense tile.
    out2 = jax.block_until_ready(
        normalized_focal_loss(logits, targets, gamma=gamma, scale=scale))
    assert jnp.allclose(out2, ref, **TOL), (out2, ref)

    # size_average=False (sum reduction) path.
    ref_sum = jax.block_until_ready(
        _nfl_reference(logits, targets, gamma=gamma, scale=scale,
                       size_average=False))
    out3 = jax.block_until_ready(
        normalized_focal_loss(logits, targets, gamma=gamma, scale=scale,
                              size_average=False))
    assert jnp.allclose(out3, ref_sum, atol=1e-2, rtol=5e-3), (out3, ref_sum)

    print("KERNEL_OK")
</pallas_src>

<mosaic_0001>
module attributes {stable_mosaic.version = 11 : i64} {
  func.func @_nfl_kernel(%arg0: i32, %arg1: memref<10x128xf32, #tpu.memory_space<vmem>>, %arg2: memref<1x128xi32, #tpu.memory_space<vmem>>, %arg3: memref<1x128xf32, #tpu.memory_space<vmem>>) attributes {dimension_semantics = [#tpu.dimension_semantics<parallel>], iteration_bounds = array<i64: 3>, scalar_prefetch = 0 : i64, scratch_operands = 0 : i64, tpu.core_type = #tpu.core_type<tc>, window_params = [{transform_indices = @transform_0, window_bounds = array<i64: 10, 128>}, {transform_indices = @transform_1, window_bounds = array<i64: 1, 128>}, {transform_indices = @transform_2, window_bounds = array<i64: 1, 128>}]} {
    %c0 = arith.constant 0 : index
    %c0_0 = arith.constant 0 : index
    %0 = vector.load %arg1[%c0, %c0_0] : memref<10x128xf32, #tpu.memory_space<vmem>>, vector<10x128xf32>
    %c0_1 = arith.constant 0 : index
    %c0_2 = arith.constant 0 : index
    %1 = vector.load %arg2[%c0_1, %c0_2] : memref<1x128xi32, #tpu.memory_space<vmem>>, vector<1x128xi32>
    %cst = arith.constant dense<0xFF800000> : vector<128xf32>
    %2 = vector.multi_reduction <maximumf>, %0, %cst [0] : vector<10x128xf32> to vector<128xf32>
    %3 = vector.shape_cast %2 : vector<128xf32> to vector<1x128xf32>
    %4 = vector.broadcast %3 : vector<1x128xf32> to vector<10x128xf32>
    %5 = arith.subf %0, %4 : vector<10x128xf32>
    %6 = math.exp %5 : vector<10x128xf32>
    %cst_3 = arith.constant dense<0.000000e+00> : vector<128xf32>
    %7 = vector.multi_reduction <add>, %6, %cst_3 [0] : vector<10x128xf32> to vector<128xf32>
    %8 = vector.shape_cast %7 : vector<128xf32> to vector<1x128xf32>
    %9 = math.log %8 : vector<1x128xf32>
    %10 = vector.broadcast %9 : vector<1x128xf32> to vector<10x128xf32>
    %11 = arith.subf %5, %10 : vector<10x128xf32>
    %12 = tpu.reciprocal %8 {approx = true} : vector<1x128xf32> -> vector<1x128xf32>
    %13 = vector.broadcast %12 : vector<1x128xf32> to vector<10x128xf32>
    %14 = arith.mulf %6, %13 : vector<10x128xf32>
    %cst_4 = arith.constant 1.000000e+00 : f32
    %15 = vector.broadcast %cst_4 : f32 to vector<10x128xf32>
    %16 = arith.subf %15, %14 : vector<10x128xf32>
    %cst_5 = arith.constant 0.000000e+00 : f32
    %17 = vector.broadcast %cst_5 : f32 to vector<10x128xf32>
    %18 = arith.maximumf %16, %17 : vector<10x128xf32>
    %19 = math.sqrt %18 : vector<10x128xf32>
    %cst_6 = arith.constant 0.000000e+00 : f32
    %20 = vector.broadcast %cst_6 : f32 to vector<10x128xf32>
    %21 = arith.subf %20, %19 : vector<10x128xf32>
    %22 = arith.mulf %21, %11 : vector<10x128xf32>
    %cst_7 = arith.constant dense<0.000000e+00> : vector<128xf32>
    %23 = vector.multi_reduction <add>, %22, %cst_7 [0] : vector<10x128xf32> to vector<128xf32>
    %24 = vector.shape_cast %23 : vector<128xf32> to vector<1x128xf32>
    %25 = tpu.iota {dimensions = array<i32: 0>} : vector<10x128xi32>
    %26 = vector.broadcast %1 : vector<1x128xi32> to vector<10x128xi32>
    %27 = arith.cmpi eq, %25, %26 : vector<10x128xi32>
    %cst_8 = arith.constant 0.000000e+00 : f32
    %28 = vector.broadcast %cst_8 : f32 to vector<10x128xf32>
    %29 = arith.select %27, %11, %28 : vector<10x128xi1>, vector<10x128xf32>
    %cst_9 = arith.constant dense<0.000000e+00> : vector<128xf32>
    %30 = vector.multi_reduction <add>, %29, %cst_9 [0] : vector<10x128xf32> to vector<128xf32>
    %31 = vector.shape_cast %30 : vector<128xf32> to vector<1x128xf32>
    %cst_10 = arith.constant 0.000000e+00 : f32
    %32 = vector.broadcast %cst_10 : f32 to vector<10x128xf32>
    %33 = arith.select %27, %14, %32 : vector<10x128xi1>, vector<10x128xf32>
    %cst_11 = arith.constant dense<0.000000e+00> : vector<128xf32>
    %34 = vector.multi_reduction <add>, %33, %cst_11 [0] : vector<10x128xf32> to vector<128xf32>
    %35 = vector.shape_cast %34 : vector<128xf32> to vector<1x128xf32>
    %cst_12 = arith.constant 1.000000e+00 : f32
    %36 = vector.broadcast %cst_12 : f32 to vector<1x128xf32>
    %37 = arith.subf %36, %35 : vector<1x128xf32>
    %cst_13 = arith.constant 0.000000e+00 : f32
    %38 = vector.broadcast %cst_13 : f32 to vector<1x128xf32>
    %39 = arith.maximumf %37, %38 : vector<1x128xf32>
    %40 = math.sqrt %39 : vector<1x128xf32>
    %cst_14 = arith.constant 0.000000e+00 : f32
    %41 = vector.broadcast %cst_14 : f32 to vector<1x128xf32>
    %42 = arith.subf %41, %40 : vector<1x128xf32>
    %43 = arith.mulf %42, %31 : vector<1x128xf32>
    %44 = tpu.reciprocal %24 {approx = true} : vector<1x128xf32> -> vector<1x128xf32>
    %45 = arith.mulf %43, %44 : vector<1x128xf32>
    %c2_i32 = arith.constant 2 : i32
    %46 = arith.cmpi eq, %arg0, %c2_i32 : i32
    %47 = arith.extui %46 : i1 to i32
    %c0_i32 = arith.constant 0 : i32
    %48 = arith.cmpi ne, %47, %c0_i32 : i32
    scf.if %48 {
      %52 = tpu.iota {dimensions = array<i32: 1>} : vector<1x128xi32>
      %c128_i32 = arith.constant 128 : i32
      %53 = arith.muli %arg0, %c128_i32 : i32
      %54 = vector.broadcast %53 : i32 to vector<1x128xi32>
      %55 = arith.addi %52, %54 : vector<1x128xi32>
      %c300_i32 = arith.constant 300 : i32
      %56 = vector.broadcast %c300_i32 : i32 to vector<1x128xi32>
      %57 = arith.cmpi slt, %55, %56 : vector<1x128xi32>
      %cst_17 = arith.constant 0.000000e+00 : f32
      %58 = vector.broadcast %cst_17 : f32 to vector<1x128xf32>
      %59 = arith.select %57, %45, %58 : vector<1x128xi1>, vector<1x128xf32>
      %c0_18 = arith.constant 0 : index
      %c0_19 = arith.constant 0 : index
      %60 = vector.load %arg3[%c0_18, %c0_19] : memref<1x128xf32, #tpu.memory_space<vmem>>, vector<1x128xf32>
      tpu.vector_store %arg3[%c0_18, %c0_19], %59 {strides = array<i32>} : memref<1x128xf32, #tpu.memory_space<vmem>>, vector<1x128xf32>,
    } else {
    }
    %c2_i32_15 = arith.constant 2 : i32
    %49 = arith.cmpi ne, %arg0, %c2_i32_15 : i32
    %50 = arith.extui %49 : i1 to i32
    %c0_i32_16 = arith.constant 0 : i32
    %51 = arith.cmpi ne, %50, %c0_i32_16 : i32
    scf.if %51 {
      %c0_17 = arith.constant 0 : index
      %c0_18 = arith.constant 0 : index
      %52 = vector.load %arg3[%c0_17, %c0_18] : memref<1x128xf32, #tpu.memory_space<vmem>>, vector<1x128xf32>
      tpu.vector_store %arg3[%c0_17, %c0_18], %45 {strides = array<i32>} : memref<1x128xf32, #tpu.memory_space<vmem>>, vector<1x128xf32>,
    } else {
    }
    return
  }
  func.func @transform_0(%arg0: i32) -> (i32, i32) {
    %c0_i32 = arith.constant 0 : i32
    %c0_i32_0 = arith.constant 0 : i32
    return %c0_i32, %arg0 : i32, i32
  }
  func.func @transform_1(%arg0: i32) -> (i32, i32) {
    %c0_i32 = arith.constant 0 : i32
    %c0_i32_0 = arith.constant 0 : i32
    return %c0_i32, %arg0 : i32, i32
  }
  func.func @transform_2(%arg0: i32) -> (i32, i32) {
    %c0_i32 = arith.constant 0 : i32
    %c0_i32_0 = arith.constant 0 : i32
    return %c0_i32, %arg0 : i32, i32
  }
}

</mosaic_0001>

<bundles_post_ra>
// kernel: tpu_custom_call.1
= control target key start
LH: loop header
LB: loop body
LE: loop exit
PB: predicated region body
PF: predicated region fallthrough
CT: control target
= control target key end

     0   :  { %7 = vsyncpa [#allocation3], 0  ;;  %s758_s0 = inlined_call_operand.hbm [shape: f32[10,300], index: 0, kind: input, shape index: {}]   ;;  %s759_s1 = inlined_call_operand.vmem [shape: s32[1,300], index: 1, kind: input, shape index: {}]   ;;  %s760_s2 = inlined_call_operand.hbm [shape: f32[1,384], index: 2, kind: output, shape index: {}]  }
   0x1   :  { %9 = vsyncpa [#allocation3 + $0x1], 0 }
   0x2   :  { %10 = vsyncpa [#allocation4], 0 }
   0x3   :  { %12 = vsyncpa [#allocation4 + $0x1], 0  ;;  %s581_s9 = smov 0   ;;  %s583_s10 = smov 0  }
   0x4   :  { %s585_s11 = smov 0   ;;  %s587_s12 = smov 0  }
   0x5 LB: > { %s602_s13 = sadd.s32 4294967295, %s559_s12   ;;  %s384_s14 = sadd.s32 4294967294, %s559_s12   ;;  %s559_s12 = sphi %s587_s12, %s775_s12   ;;  %s555_s11 = sphi %s585_s11, %s774_s11   ;;  %s551_s10 = sphi %s583_s10, %s773_s10   ;;  %s547_s9 = sphi %s581_s9, %s772_s9  }
   0x6   : > { %s606_s15 = sadd.s32 1, %s559_s12   ;;  %s25_s16 = sadd.s32 1, %s555_s11 }
   0x7   : > { %s22_s17 = ssub.s32 %s559_s12, %s606_s15  ;;  %p32_p0 = scmp.ne.s32.totalorder %s555_s11, %s551_s10 }
   0x8   : > { %p23_p1 = scmp.eq.s32.totalorder %s22_s17, 0  ;;  %p33_p2 = scmp.eq.s32.totalorder %s559_s12, 0 }
   0x9   : > { %p38_p3 = scmp.ne.s32.totalorder %s551_s10, %s547_s9  ;;  %p39_p4 = scmp.eq.s32.totalorder %s602_s13, 0 }
   0xa   : > { %s618_s18 = scalar_select %p23_p1, %s555_s11, %s25_s16  }
   0xb   : > { %p620_p5 = por %p33_p2, %p32_p0  ;;  %p624_p6 = por %p39_p4, %p38_p3 }
   0xc   : > { %p761_p7 = scmp.eq.s32.totalorder %s602_s13, 2  ;;  %p94_p8 = scmp.eq.s32.totalorder %s384_s14, 2 }
   0xd   : > { %p410_p9 = scmp.lt.s32.totalorder %s559_s12, 3  ;;  %s114_s23 = sand.u32 1, %s555_s11  }
   0xe   : > { %p632_p10 = por %p761_p7, %p32_p0  ;;  %p636_p11 = por %p94_p8, %p38_p3 }
   0xf   : > { %s388_s24 = sshll.u32 %s559_s12, 7  ;;  %s387_s25 = sshll.u32 %s114_s23, 4 }
  0x10   : > { %s765_s21 = scalar_select %p632_p10, 1, 0 }
  0x11   : > { %s766_s22 = scalar_select %p636_p11, 1, 0 }
  0x12   : > { %s645_s28 = scalar_lea.hbm %s758_s0, %s388_s24  ;;  %s118_s29 = scalar_lea.vmem [#allocation2], %s387_s25 }
  0x13   : > { %s124_s30 = sshll.u32 %s118_s29, 4  ;;  %p649_p12 = pnand %p410_p9, %p620_p5  ;;  %s653_s30 = int_to_ptr.vmem [resolvable:$true] %s124_s30 }
  0x14   : > { %s656_s4 = scalar_lea.sflag [#allocation3], %s114_s23  ;;  %s463_s5 = scalar_lea.hbm %s645_s28, 256 }
  0x15   : > { %p464_p0 = scmp.ne.s32.totalorder %s645_s28, %s463_s5  ;;  %p465_p1 = pneg %p649_p12 }
  0x16   : > { %s468_s8 = scalar_lea.hbm %s758_s0, 768  ;;  %p469_p4 = scmp.lt.u32.totalorder %s645_s28, %s758_s0 }
  0x17   : > { %p466_p2 = pnand %p465_p1, %p464_p0  ;;  %p470_p5 = scmp.lt.u32.totalorder %s468_s8, %s463_s5 }
  0x18   : > { %p472_p9 = scmp.lt.u32.totalorder %s463_s5, %s645_s28 }
  0x19   : > { %p467_p3 = pneg %p466_p2  ;;  %p471_p8 = por %p470_p5, %p469_p4 }
  0x1b   : > { %p473_p7 = por %p472_p9, %p471_p8 }
  0x1d   : > { %p474_p13 = pnand %p473_p7, %p467_p3 }
  0x1f   : > { %477 = shalt.err (!%p474_p13)
}
  0x20   : > { %s478_s17 = scalar_lea.vmem %s653_s30, 256  ;;  %s561_s19 = smov [#allocation2]  }
  0x21   : > { %p479_p0 = scmp.ne.s32.totalorder %s653_s30, %s478_s17  ;;  %s483_s23 = sshll.u32 %s561_s19, 4  ;;  %s484_s23 = int_to_ptr.vmem [resolvable:$false] %s483_s23 }
  0x22   : > { %s485_s24 = scalar_lea.vmem %s484_s23, 512  ;;  %p486_p10 = scmp.lt.s32.totalorder %s653_s30, %s484_s23 }
  0x23   : > { %p481_p2 = pnand %p479_p0, %p465_p1  ;;  %p487_p4 = scmp.lt.s32.totalorder %s485_s24, %s478_s17 }
  0x25   : > { %p482_p11 = pneg %p481_p2  ;;  %p488_p5 = por %p487_p4, %p486_p10 }
  0x27   : > { %p489_p8 = pnand %p488_p5, %p482_p11 }
  0x29   : > { %492 = shalt.err (!%p489_p8)
}
  0x2a   : > { %s562_s25 = smov 384   ;;  %s563_s26 = smov 128  }
  0x2b   : > { %s564_s27 = smov 8   ;;  %p138_p7 = scmp.lt.s32.totalorder %s559_s12, 4 }
  0x2c   : > { %405 = dma.hbm_to_vmem [thread:$0]  (!%p649_p12), %s645_s28, 256, %s653_s30, %s656_s4, %s562_s25, %s563_s26, %s564_s27  }
  0x2d   : > { %p768_p13 = scmp.ge.s32.totalorder %s559_s12, 1 }
  0x2f   : > { %p139_p1 = pnand %p768_p13, %p138_p7 }
  0x30   : > { %s688_s29 = sand.u32 (!%p139_p1), 1, %s551_s10  }
  0x31   : > { %142 = sbr.rel (%p139_p1) target bundleno = 205 (0xcd), region = 28  ;;  %s390_s5 = sshll.u32 (!%p139_p1), %s688_s29, 4 }
  0x32   : > { %s145_s6 = scalar_lea.sflag (!%p139_p1), [#allocation3], %s688_s29  ;;  %s148_s7 = scalar_lea.vmem (!%p139_p1), [#allocation2], %s390_s5 }
  0x38   : > { %538 = dma.done.wait (%p624_p6), %s145_s6, 256  }
  0x39   : > { %540 = vsyncadd (%p624_p6), %s145_s6, 4294967040  ;;  %vm177_vm0 = vcmask 1041408   ;;  %v174_v0 = vld [vmem:[%s148_s7] sm:$0xff]  ;;  %v175_v1 = vld [vmem:[%s148_s7 + $0x8] sm:$0x3]  ;;  %p171_p6 = scmp.lt.s32.totalorder %s602_s13, 2  ;;  %v237_v24 = vlaneseq }
  0x3a   : > { %v178_v2 = vsel %vm177_vm0, %v175_v1, -inf  ;;  %s170_s4 = scalar_lea.vmem [#allocation5], %s688_s29  ;;  %p392_p10 = scmp.ne.s32.totalorder %s602_s13, 2 }
  0x3b   : > { %v179_v3 = vmax.f32 %v174_v0, %v178_v2  ;;  %s172_s20 = scalar_select %p171_p6, %s602_s13, 2  ;;  %v238_v25 = vshrl.u32 %v237_v24, 7 }
  0x3c   : > { %s393_s8 = sshll.u32 (!%p392_p10), %s602_s13, 7 }
  0x3d   : > { %v180_v4 = vrot.slane %v179_v3, 4  ;;  %s173_s3 = scalar_lea.vmem %s759_s1, %s172_s20  ;;  %v239_v26 = vadd.s32 8, %v238_v25 }
  0x3e   : > { %v391_v27 = vld [vmem:[%s173_s3] ss:$0 sm:$0xff] }
  0x3f   : > { %v181_v5 = vmax.f32 %v179_v3, %v180_v4  ;;  %vm244_vm1 = vcmp.eq.s32.totalorder %v238_v25, %v391_v27  ;;  %vm245_vm2 = vcmp.eq.s32.totalorder %v239_v26, %v391_v27 }
  0x41   : > { %v182_v6 = vrot.slane %v181_v5, 2 }
  0x43   : > { %v183_v7 = vmax.f32 %v181_v5, %v182_v6 }
  0x45   : > { %v184_v8 = vrot.slane %v183_v7, 1 }
  0x47   : > { %v185_v9 = vmax.f32 %v183_v7, %v184_v8 }
  0x49   : > { %v186_v10 = vsub.f32 %v174_v0, %v185_v9  ;;  %v187_v11 = vsub.f32 %v175_v1, %v185_v9 }
  0x4b   : > { %v188_v12 = vmul.f32 1.442695, %v186_v10  ;;  %v190_v13 = vmul.f32 1.442695, %v187_v11 }
  0x4d   : > { %447 = vpow2.f32 %v188_v12 }
  0x4e   : > { %449 = vpow2.f32 %v190_v13 }
  0x57   : > { %v448_v14 = vpop.eup %447 }
  0x58   : > { %v450_v15 = vpop.eup %449 }
  0x59   : > { %v192_v16 = vsel %vm177_vm0, %v450_v15, 0.0 }
  0x5a   : > { %v193_v17 = vadd.f32 %v448_v14, %v192_v16 }
  0x5c   : > { %v194_v18 = vrot.slane %v193_v17, 4 }
  0x5e   : > { %v195_v19 = vadd.f32 %v194_v18, %v193_v17 }
  0x60   : > { %v196_v20 = vrot.slane %v195_v19, 2 }
  0x62   : > { %v197_v21 = vadd.f32 %v196_v20, %v195_v19 }
  0x64   : > { %v198_v22 = vrot.slane %v197_v21, 1 }
  0x66   : > { %v199_v23 = vadd.f32 %v198_v22, %v197_v21 }
  0x68   : > { %451 = vrcp.f32 %v199_v23 }
  0x69   : > { %453 = vlog2.f32 %v199_v23 }
  0x72   : > { %v452_v28 = vpop.eup %451 }
  0x73   : > { %v205_v29 = vmul.f32 %v452_v28, %v448_v14  ;;  %v206_v30 = vmul.f32 %v452_v28, %v450_v15  ;;  %v454_v36 = vpop.eup %453 }
  0x74   : > { %v201_v40 = vmul.f32 0.6931472, %v454_v36 }
  0x75   : > { %v207_v31 = vsub.f32 1.0, %v205_v29  ;;  %v208_v32 = vsub.f32 1.0, %v206_v30  ;;  %v256_v33 = vsel %vm244_vm1, %v205_v29, 0.0  ;;  %v257_v34 = vsel %vm245_vm2, %v206_v30, 0.0 }
  0x76   : > { %v258_v35 = vsel %vm177_vm0, %v257_v34, 0.0  ;;  %v203_v43 = vsub.f32 %v187_v11, %v201_v40  ;;  %v202_v45 = vsub.f32 %v186_v10, %v201_v40  ;;  %v284_v29 = vand.u32 (!%p392_p10), 127, %v237_v24 }
  0x77   : > { %v209_v37 = vmax.f32 %v207_v31, 0.0  ;;  %v210_v38 = vmax.f32 %v208_v32, 0.0  ;;  %v259_v39 = vadd.f32 %v258_v35, %v256_v33  ;;  %v286_v30 = vstv (!%p392_p10), %s393_s8 }
  0x78   : > { %v247_v46 = vsel %vm245_vm2, %v203_v43, 0.0  ;;  %v246_v48 = vsel %vm244_vm1, %v202_v45, 0.0  ;;  %v287_v31 = vadd.s32 (!%p392_p10), %v286_v30, %v284_v29 }
  0x79   : > { %455 = vrsqrt.f32 %v209_v37  ;;  %v260_v41 = vrot.slane %v259_v39, 4  ;;  %vm213_vm3 = vcmp.eq.f32.partialorder %v209_v37, inf  ;;  %v216_v50 = vand.u32 2147483648, %v209_v37 }
  0x7a   : > { %457 = vrsqrt.f32 %v210_v38  ;;  %v248_v51 = vsel %vm177_vm0, %v247_v46, 0.0  ;;  %vm215_vm4 = vcmp.eq.f32.partialorder %v209_v37, 0.0  ;;  %vm220_vm5 = vcmp.eq.f32.partialorder %v210_v38, inf }
  0x7b   : > { %v261_v42 = vadd.f32 %v260_v41, %v259_v39  ;;  %v223_v55 = vand.u32 2147483648, %v210_v38  ;;  %vm222_vm6 = vcmp.eq.f32.partialorder %v210_v38, 0.0  ;;  %v249_v61 = vadd.f32 %v248_v51, %v246_v48 }
  0x7c   : > { %vm288_vm9 = vcmp.lt.s32.totalorder (!%p392_p10), %v287_v31, 300 }
  0x7d   : > { %v262_v44 = vrot.slane %v261_v42, 2  ;;  %v250_v5 = vrot.slane %v249_v61, 4 }
  0x7f   : > { %v263_v47 = vadd.f32 %v262_v44, %v261_v42  ;;  %v251_v8 = vadd.f32 %v250_v5, %v249_v61 }
  0x81   : > { %v264_v52 = vrot.slane %v263_v47, 1  ;;  %v252_v11 = vrot.slane %v251_v8, 2 }
  0x83   : > { %v456_v49 = vpop.eup %455  ;;  %v265_v57 = vadd.f32 %v264_v52, %v263_v47  ;;  %v253_v16 = vadd.f32 %v252_v11, %v251_v8 }
  0x84   : > { %v458_v53 = vpop.eup %457  ;;  %v212_v54 = vmul.f32 %v456_v49, %v209_v37 }
  0x85   : > { %v219_v56 = vmul.f32 %v458_v53, %v210_v38  ;;  %v266_v62 = vsub.f32 1.0, %v265_v57  ;;  %v254_v21 = vrot.slane %v253_v16, 1 }
  0x86   : > { %v214_v58 = vsel %vm213_vm3, %v209_v37, %v212_v54 }
  0x87   : > { %v217_v59 = vsel %vm215_vm4, %v216_v50, %v214_v58  ;;  %v221_v60 = vsel %vm220_vm5, %v210_v38, %v219_v56  ;;  %v267_v2 = vmax.f32 %v266_v62, 0.0  ;;  %v255_v23 = vadd.f32 %v254_v21, %v253_v16 }
  0x88   : > { %v224_v63 = vsel %vm222_vm6, %v223_v55, %v221_v60  ;;  %v225_v0 = vsub.f32 0.0, %v217_v59 }
  0x89   : > { %v226_v1 = vsub.f32 0.0, %v224_v63  ;;  %459 = vrsqrt.f32 %v267_v2  ;;  %vm270_vm7 = vcmp.eq.f32.partialorder %v267_v2, inf  ;;  %v273_v18 = vand.u32 2147483648, %v267_v2 }
  0x8a   : > { %v227_v3 = vmul.f32 %v225_v0, %v202_v45  ;;  %vm272_vm8 = vcmp.eq.f32.partialorder %v267_v2, 0.0 }
  0x8b   : > { %v228_v4 = vmul.f32 %v226_v1, %v203_v43 }
  0x8d   : > { %v229_v6 = vsel %vm177_vm0, %v228_v4, 0.0 }
  0x8e   : > { %v230_v7 = vadd.f32 %v229_v6, %v227_v3 }
  0x90   : > { %v231_v9 = vrot.slane %v230_v7, 4 }
  0x92   : > { %v232_v10 = vadd.f32 %v231_v9, %v230_v7 }
  0x93   : > { %v460_v13 = vpop.eup %459 }
  0x94   : > { %v233_v12 = vrot.slane %v232_v10, 2  ;;  %v269_v15 = vmul.f32 %v460_v13, %v267_v2 }
  0x96   : > { %v234_v14 = vadd.f32 %v233_v12, %v232_v10  ;;  %v271_v19 = vsel %vm270_vm7, %v267_v2, %v269_v15 }
  0x97   : > { %v274_v22 = vsel %vm272_vm8, %v273_v18, %v271_v19 }
  0x98   : > { %v235_v17 = vrot.slane %v234_v14, 1  ;;  %v275_v25 = vsub.f32 0.0, %v274_v22 }
  0x9a   : > { %v236_v20 = vadd.f32 %v235_v17, %v234_v14  ;;  %v276_v26 = vmul.f32 %v275_v25, %v255_v23 }
  0x9c   : > { %461 = vrcp.f32 %v236_v20 }
  0xa1   : > { %282 = sbr.rel (%p392_p10) target bundleno = 171 (0xab), region = 36 }
  0xa6   : > { %v462_v27 = vpop.eup %461 }
  0xa7   : > { %v278_v28 = vmul.f32 %v462_v27, %v276_v26 }
  0xa9   : > { %v289_v32 = vsel %vm288_vm9, %v278_v28, 0.0 }
  0xaa   : > { %290 = vst [vmem:[%s170_s4] sm:$0x1] %v289_v32 }
  0xab PF: > { %p769_p11 = scmp.eq.s32.totalorder %s602_s13, 2 }
  0xac   : > { %295 = vst [vmem:[%s170_s4] sm:$0x1] (!%p769_p11), %v278_v28 }
  0xad   : > { %294 = sbr.rel (%p769_p11) target bundleno = 180 (0xb4), region = 40 }
  0xb4 PF: > { %s395_s14 = sshll.u32 %s602_s13, 4  ;;  %s309_s23 = sshll.u32 %s170_s4, 4  ;;  %s310_s23 = int_to_ptr.vmem [resolvable:$true] %s309_s23 }
  0xb5   : > { %s721_s19 = scalar_lea.hbm %s760_s2, %s395_s14  ;;  %s297_s24 = scalar_lea.sflag [#allocation4], %s688_s29 }
  0xb6   : > { %s493_s25 = scalar_lea.vmem %s310_s23, 16  ;;  %p770_p3 = scmp.ne.s32.totalorder %s765_s21, 0 }
  0xb7   : > { %p494_p12 = scmp.ne.s32.totalorder %s310_s23, %s493_s25  ;;  %s565_s26 = smov [#allocation5]  }
  0xb8   : > { %s497_s27 = sshll.u32 %s565_s26, 4  ;;  %s498_s27 = int_to_ptr.vmem [resolvable:$false] %s497_s27 }
  0xb9   : > { %p495_p9 = pnand %p494_p12, %p770_p3  ;;  %s499_s5 = scalar_lea.vmem %s498_s27, 32 }
  0xba   : > { %p500_p2 = scmp.lt.s32.totalorder %s310_s23, %s498_s27  ;;  %p501_p4 = scmp.lt.s32.totalorder %s499_s5, %s493_s25 }
  0xbb   : > { %p496_p0 = pneg %p495_p9 }
  0xbc   : > { %p502_p5 = por %p501_p4, %p500_p2 }
  0xbe   : > { %p503_p8 = pnand %p502_p5, %p496_p0 }
  0xc0   : > { %506 = shalt.err (!%p503_p8)
}
  0xc1   : > { %s507_s13 = scalar_lea.hbm %s721_s19, 16  ;;  %s511_s7 = scalar_lea.hbm %s760_s2, 48 }
  0xc2   : > { %p508_p7 = scmp.ne.s32.totalorder %s721_s19, %s507_s13  ;;  %p512_p6 = scmp.lt.u32.totalorder %s721_s19, %s760_s2 }
  0xc3   : > { %p513_p10 = scmp.lt.u32.totalorder %s511_s7, %s507_s13  ;;  %p515_p12 = scmp.lt.u32.totalorder %s507_s13, %s721_s19 }
  0xc4   : > { %p509_p13 = pnand %p508_p7, %p770_p3 }
  0xc5   : > { %p514_p11 = por %p513_p10, %p512_p6 }
  0xc6   : > { %p510_p1 = pneg %p509_p13 }
  0xc7   : > { %p516_p9 = por %p515_p12, %p514_p11 }
  0xc9   : > { %p517_p0 = pnand %p516_p9, %p510_p1 }
  0xcb   : > { %520 = shalt.err (!%p517_p0)
}
  0xcc   : > { %400 = dma.vmem_to_hbm [thread:$0]  (%p770_p3), %s310_s23, 16, %s721_s19, %s297_s24  }
  0xcd PF: > { %p411_p2 = scmp.ge.s32.totalorder %s559_s12, 2  ;;  %s321_s30 = sand.u32 1, %s547_s9  }
  0xce   : > { %p771_p4 = scmp.ne.s32.totalorder %s766_s22, 0  ;;  %s322_s3 = scalar_lea.sflag [#allocation4], %s321_s30 }
  0xd0   : > { %p407_p5 = pnand %p411_p2, %p771_p4 }
  0xd2   : > { %542 = dma.done.wait (!%p407_p5), %s322_s3, 16  }
  0xd3   : > { %544 = vsyncadd (!%p407_p5), %s322_s3, 4294967280  ;;  %p15_p8 = scmp.ge.s32.totalorder %s606_s15, 5   ;;  %s772_s9 = smov %s551_s10 }
  0xd4   : > { %s773_s10 = smov %s555_s11  ;;  %s774_s11 = smov %s618_s18 }
  0xd5   : > { %s775_s12 = smov %s606_s15  ;;  %17 = sbr.rel (!%p15_p8) target bundleno = 5 (0x5), region = 84 }
  0xdc   :  { %326 = vsyncpa [#allocation3], 1 }
  0xdd   :  { %328 = vsyncpa [#allocation3 + $0x1], 1 }
  0xde   :  { %329 = vsyncpa [#allocation4], 1 }
  0xdf   :  { %331 = vsyncpa [#allocation4 + $0x1], 1 }

</bundles_post_ra>
